<compile_context>
chip_gen: v6e
topology: v6e:2x2x1
jax: 0.10.0
libtpu: 0.0.40
codegen_flags: <defaults>
</compile_context>

<pallas_src>
import functools

import jax
import jax.numpy as jnp
from jax.experimental import pallas as pl
from jax.experimental.pallas import tpu as pltpu

LANE = 128  # padded feature width for the hidden layers / output slab


def _round_up(x, m):
    return ((x + m - 1) // m) * m


def dqn_mlp_kernel(x_ref, p_ref, out_ref, *, k_in):
    """Fused 3-layer MLP.

    x_ref:   (Bt, k_in)        raw state tile (f32)
    p_ref:   (k_in+8+256, 128) packed params: W1 | b1-row | W2(+b2) | W3(+b3)
    out_ref: (Bt, 128)         Q-values in lanes [0, n_actions)
    """
    cdt = p_ref.dtype                                   # compute dtype (f32 or bf16)
    x = x_ref[...].astype(cdt)

    w1 = p_ref[0:k_in, :]                               # (k_in, 128)
    b1 = p_ref[k_in:k_in + 1, :].astype(jnp.float32)    # (1, 128) bias + ones-lane marker
    w2o = k_in + 8
    w2 = p_ref[w2o:w2o + LANE, :]                       # (128, 128), b2 folded in row fc1
    w3o = w2o + LANE
    w3 = p_ref[w3o:w3o + LANE, :]                       # (128, 128), b3 folded in row fc2

    h1 = jnp.maximum(jnp.dot(x, w1, preferred_element_type=jnp.float32) + b1, 0.0)
    h2 = jnp.maximum(jnp.dot(h1.astype(cdt), w2, preferred_element_type=jnp.float32), 0.0)
    out_ref[...] = jnp.dot(h2.astype(cdt), w3, preferred_element_type=jnp.float32)


def pack_params(p, input_dims, fc1_dims, fc2_dims, n_actions, dtype=jnp.float32):
    """Pack all weights/biases into one (K_IN + 8 + 256, 128) buffer.

    Biases b2/b3 are folded into W2/W3 via a ones-lane chained through the
    hidden activations; b1 stays as a single (1,128) row (also carrying the
    ones-lane marker at column fc1_dims).
    """
    assert fc1_dims < LANE and fc2_dims < LANE and n_actions <= LANE
    k_in = _round_up(input_dims, 8)
    rows = k_in + 8 + 2 * LANE
    buf = jnp.zeros((rows, LANE), jnp.float32)

    # layer 1 weights; column fc1_dims stays zero (source of the ones lane)
    buf = buf.at[0:input_dims, 0:fc1_dims].set(p["w1"])
    # bias row: b1, plus 1.0 at column fc1_dims -> h1[:, fc1_dims] == 1
    buf = buf.at[k_in, 0:fc1_dims].set(p["b1"])
    buf = buf.at[k_in, fc1_dims].set(1.0)
    # layer 2 weights with b2 folded into row fc1_dims; chain ones lane to fc2_dims
    w2o = k_in + 8
    buf = buf.at[w2o:w2o + fc1_dims, 0:fc2_dims].set(p["w2"])
    buf = buf.at[w2o + fc1_dims, 0:fc2_dims].set(p["b2"])
    buf = buf.at[w2o + fc1_dims, fc2_dims].set(1.0)
    # layer 3 weights with b3 folded into row fc2_dims
    w3o = w2o + LANE
    buf = buf.at[w3o:w3o + fc2_dims, 0:n_actions].set(p["w3"])
    buf = buf.at[w3o + fc2_dims, 0:n_actions].set(p["b3"])
    return buf.astype(dtype)


@functools.partial(jax.jit, static_argnames=("n_actions", "block_b"))
def dqn_forward(state, packed_params, *, n_actions, block_b=512):
    """state: (B, input_dims) or (input_dims,). Returns (B, n_actions) Q-values."""
    x = jnp.asarray(state, jnp.float32)
    squeeze = x.ndim == 1
    if squeeze:
        x = x[None, :]
    B, in_dims = x.shape

    k_in = packed_params.shape[0] - 8 - 2 * LANE
    if in_dims != k_in:  # only when input_dims isn't 8-aligned (<=7 extra lanes)
        x = jnp.pad(x, ((0, 0), (0, k_in - in_dims)))

    # Batch tiling: single full-array tile (no padding at all) for small /
    # inference batches; >=2 tiles for larger batches so both v7x TensorCores
    # get work (harmless on single-TC v5e/v6e).
    if B <= 16:
        Bt = Bp = B
    else:
        Bt = min(block_b, _round_up((B + 1) // 2, 8))
        Bp = _round_up(B, Bt)
    n_tiles = Bp // Bt
    if Bp != B:
        x = jnp.pad(x, ((0, Bp - B), (0, 0)))

    out = pl.pallas_call(
        functools.partial(dqn_mlp_kernel, k_in=k_in),
        out_shape=jax.ShapeDtypeStruct((Bp, LANE), jnp.float32),
        grid=(n_tiles,),
        in_specs=[
            pl.BlockSpec((Bt, k_in), lambda i: (i, 0)),              # batch-tiled state
            pl.BlockSpec(packed_params.shape, lambda i: (0, 0)),     # weights stay resident
        ],
        out_specs=pl.BlockSpec((Bt, LANE), lambda i: (i, 0)),        # lane-dense output
        compiler_params=pltpu.CompilerParams(
            dimension_semantics=("parallel",)),
    )(x, packed_params)

    out = out[:B, :n_actions]
    return out[0] if squeeze else out


def init_params(key, input_dims, fc1_dims, fc2_dims, n_actions):
    """Deterministic init mimicking nn.Linear default (U(-1/sqrt(fan_in), +))."""
    ks = jax.random.split(key, 6)

    def linear(kw, kb, fan_in, fan_out):
        bound = 1.0 / jnp.sqrt(jnp.float32(fan_in))
        w = jax.random.uniform(kw, (fan_in, fan_out), jnp.float32, -bound, bound)
        b = jax.random.uniform(kb, (fan_out,), jnp.float32, -bound, bound)
        return w, b

    w1, b1 = linear(ks[0], ks[1], input_dims, fc1_dims)
    w2, b2 = linear(ks[2], ks[3], fc1_dims, fc2_dims)
    w3, b3 = linear(ks[4], ks[5], fc2_dims, n_actions)
    return {"w1": w1, "b1": b1, "w2": w2, "b2": b2, "w3": w3, "b3": b3}


def dqn_forward_ref(state, p):
    """Pure-JAX reference on the unpadded params (correctness check)."""
    x = jnp.asarray(state, jnp.float32)
    x = jnp.maximum(x @ p["w1"] + p["b1"], 0.0)
    x = jnp.maximum(x @ p["w2"] + p["b2"], 0.0)
    return x @ p["w3"] + p["b3"]


if __name__ == "__main__":
    # Shapes consistent with Agent.__init__: fc1_dims=8, fc2_dims=16;
    # input_dims=16, n_actions=4.
    INPUT_DIMS, FC1, FC2, N_ACTIONS = 16, 8, 16, 4

    key = jax.random.PRNGKey(0)
    k_state, k_params = jax.random.split(key)

    params = init_params(k_params, INPUT_DIMS, FC1, FC2, N_ACTIONS)
    packed = pack_params(params, INPUT_DIMS, FC1, FC2, N_ACTIONS)

    # 1) Small-batch / inference-style call (single tile, no padding at all).
    state = jax.random.normal(k_state, (8, INPUT_DIMS), dtype=jnp.float32)
    actions = jax.block_until_ready(dqn_forward(state, packed, n_actions=N_ACTIONS))
    ref = dqn_forward_ref(state, params)
    assert actions.shape == (8, N_ACTIONS)
    assert jnp.allclose(actions, ref, atol=1e-4, rtol=1e-4)

    # 2) Replay-buffer-sized batch (BATCHSIZE=100 -> 2 tiles, exercises padding
    #    and the v7x dual-TensorCore split path).
    big_state = jax.random.normal(k_state, (100, INPUT_DIMS), dtype=jnp.float32)
    big_out = jax.block_until_ready(dqn_forward(big_state, packed, n_actions=N_ACTIONS))
    assert big_out.shape == (100, N_ACTIONS)
    assert jnp.allclose(big_out, dqn_forward_ref(big_state, params), atol=1e-4, rtol=1e-4)

    # 3) Single observation (1-D state, as in choose_action).
    obs = jax.random.normal(k_state, (INPUT_DIMS,), dtype=jnp.float32)
    q = jax.block_until_ready(dqn_forward(obs, packed, n_actions=N_ACTIONS))
    assert q.shape == (N_ACTIONS,)
    assert jnp.allclose(q, dqn_forward_ref(obs, params), atol=1e-4, rtol=1e-4)

    print("KERNEL_OK")
</pallas_src>

<mosaic_0001>
module attributes {stable_mosaic.version = 11 : i64} {
  func.func @dqn_mlp_kernel(%arg0: i32, %arg1: memref<8x16xf32, #tpu.memory_space<vmem>>, %arg2: memref<280x128xf32, #tpu.memory_space<vmem>>, %arg3: memref<8x128xf32, #tpu.memory_space<vmem>>) attributes {dimension_semantics = [#tpu.dimension_semantics<parallel>], iteration_bounds = array<i64: 1>, scalar_prefetch = 0 : i64, scratch_operands = 0 : i64, tpu.core_type = #tpu.core_type<tc>, window_params = [{transform_indices = @transform_0, window_bounds = array<i64: 8, 16>}, {pipeline_mode = #tpu.pipeline_mode<synchronous>, transform_indices = @transform_1, window_bounds = array<i64: 280, 128>}, {transform_indices = @transform_2, window_bounds = array<i64: 8, 128>}]} {
    %c0 = arith.constant 0 : index
    %c0_0 = arith.constant 0 : index
    %0 = vector.load %arg1[%c0, %c0_0] : memref<8x16xf32, #tpu.memory_space<vmem>>, vector<8x16xf32>
    %c0_1 = arith.constant 0 : index
    %c0_2 = arith.constant 0 : index
    %1 = vector.load %arg2[%c0_1, %c0_2] : memref<280x128xf32, #tpu.memory_space<vmem>>, vector<16x128xf32>
    %c16 = arith.constant 16 : index
    %c0_3 = arith.constant 0 : index
    %2 = vector.load %arg2[%c16, %c0_3] : memref<280x128xf32, #tpu.memory_space<vmem>>, vector<1x128xf32>
    %c24 = arith.constant 24 : index
    %c0_4 = arith.constant 0 : index
    %3 = vector.load %arg2[%c24, %c0_4] : memref<280x128xf32, #tpu.memory_space<vmem>>, vector<128x128xf32>
    %c152 = arith.constant 152 : index
    %c0_5 = arith.constant 0 : index
    %4 = vector.load %arg2[%c152, %c0_5] : memref<280x128xf32, #tpu.memory_space<vmem>>, vector<128x128xf32>
    %cst = arith.constant dense<0.000000e+00> : vector<8x128xf32>
    %5 = tpu.matmul %0, %1, %cst {dimension_numbers = #tpu.dot_dimension_numbers<[1], [0], [0], [1], [0, 0, 1, 1], [], []>} : vector<8x16xf32>, vector<16x128xf32>, vector<8x128xf32> -> vector<8x128xf32>
    %6 = vector.broadcast %2 : vector<1x128xf32> to vector<8x128xf32>
    %7 = arith.addf %5, %6 : vector<8x128xf32>
    %cst_6 = arith.constant 0.000000e+00 : f32
    %8 = vector.broadcast %cst_6 : f32 to vector<8x128xf32>
    %9 = arith.maximumf %7, %8 : vector<8x128xf32>
    %cst_7 = arith.constant dense<0.000000e+00> : vector<8x128xf32>
    %10 = tpu.matmul %9, %3, %cst_7 {dimension_numbers = #tpu.dot_dimension_numbers<[1], [0], [0], [1], [0, 0, 1, 1], [], []>} : vector<8x128xf32>, vector<128x128xf32>, vector<8x128xf32> -> vector<8x128xf32>
    %cst_8 = arith.constant 0.000000e+00 : f32
    %11 = vector.broadcast %cst_8 : f32 to vector<8x128xf32>
    %12 = arith.maximumf %10, %11 : vector<8x128xf32>
    %cst_9 = arith.constant dense<0.000000e+00> : vector<8x128xf32>
    %13 = tpu.matmul %12, %4, %cst_9 {dimension_numbers = #tpu.dot_dimension_numbers<[1], [0], [0], [1], [0, 0, 1, 1], [], []>} : vector<8x128xf32>, vector<128x128xf32>, vector<8x128xf32> -> vector<8x128xf32>
    %c0_10 = arith.constant 0 : index
    %c0_11 = arith.constant 0 : index
    %14 = vector.load %arg3[%c0_10, %c0_11] : memref<8x128xf32, #tpu.memory_space<vmem>>, vector<8x128xf32>
    tpu.vector_store %arg3[%c0_10, %c0_11], %13 {strides = array<i32>} : memref<8x128xf32, #tpu.memory_space<vmem>>, vector<8x128xf32>,
    return
  }
  func.func @transform_0(%arg0: i32) -> (i32, i32) {
    %c0_i32 = arith.constant 0 : i32
    %c0_i32_0 = arith.constant 0 : i32
    return %arg0, %c0_i32 : i32, i32
  }
  func.func @transform_1(%arg0: i32) -> (i32, i32) {
    %c0_i32 = arith.constant 0 : i32
    %c0_i32_0 = arith.constant 0 : i32
    %c0_i32_1 = arith.constant 0 : i32
    return %c0_i32, %c0_i32_0 : i32, i32
  }
  func.func @transform_2(%arg0: i32) -> (i32, i32) {
    %c0_i32 = arith.constant 0 : i32
    %c0_i32_0 = arith.constant 0 : i32
    return %arg0, %c0_i32 : i32, i32
  }
}

</mosaic_0001>

<bundles_post_ra>
// kernel: dqn_forward.1
= control target key start
LH: loop header
LB: loop body
LE: loop exit
PB: predicated region body
PF: predicated region fallthrough
CT: control target
= control target key end

     0   :  { %7 = vsyncpa [#allocation3], 0  ;;  %s536_s0 = inlined_call_operand.hbm [shape: f32[8,16], index: 0, kind: input, shape index: {}]   ;;  %s537_s1 = inlined_call_operand.hbm [shape: f32[280,128], index: 1, kind: input, shape index: {}]   ;;  %s538_s2 = inlined_call_operand.vmem [shape: f32[8,128], index: 2, kind: output, shape index: {}]  }
   0x1   :  { %8 = vsyncpa [#allocation5], 0  ;;  %s466_s9 = smov [#allocation2]   ;;  %s467_s11 = smov [#allocation4]  }
   0x2   :  { %s15_s10 = sshll.u32 %s466_s9, 4  ;;  %s24_s12 = sshll.u32 %s467_s11, 4  ;;  %s16_s10 = int_to_ptr.vmem [resolvable:$true] %s15_s10  ;;  %s25_s12 = int_to_ptr.vmem [resolvable:$true] %s24_s12 }
   0x3   :  { %s430_s13 = scalar_lea.vmem %s16_s10, 128  ;;  %p435_p1 = scmp.lt.s32.totalorder %s16_s10, %s16_s10 }
   0x4   :  { %p431_p0 = scmp.ne.s32.totalorder %s16_s10, %s430_s13  ;;  %p436_p2 = scmp.lt.s32.totalorder %s430_s13, %s430_s13 }
   0x6   :  { %p437_p3 = por %p436_p2, %p435_p1 }
   0x8   :  { %p438_p4 = pnand %p437_p3, %p431_p0 }
   0xa   :  { %441 = shalt.err (!%p438_p4)
}
   0xb   :  { %18 = dma.hbm_to_vmem [thread:$0]  %s536_s0, 128, %s16_s10, [#allocation3]  }
   0xc   :  { %s450_s16 = scalar_lea.vmem %s25_s12, 4480  ;;  %p455_p6 = scmp.lt.s32.totalorder %s25_s12, %s25_s12 }
   0xd   :  { %p451_p5 = scmp.ne.s32.totalorder %s25_s12, %s450_s16  ;;  %p456_p7 = scmp.lt.s32.totalorder %s450_s16, %s450_s16 }
   0xf   :  { %p457_p8 = por %p456_p7, %p455_p6 }
  0x11   :  { %p458_p9 = pnand %p457_p8, %p451_p5 }
  0x13   :  { %461 = shalt.err (!%p458_p9)
}
  0x14   :  { %s468_s17 = smov 128   ;;  %s469_s18 = smov 8  }
  0x15   :  { %30 = dma.hbm_to_vmem [thread:$0]  %s537_s1, 4480, %s25_s12, [#allocation5], %s468_s17, %s468_s17, %s469_s18  }
  0x16   :  { %462 = dma.done.wait [#allocation3], 128  }
  0x17   :  { %463 = vsyncadd [#allocation3], 4294967168 }
  0x18   :  { %464 = dma.done.wait [#allocation5], 4480  }
  0x19   :  { %465 = vsyncadd [#allocation5], 4294962816  ;;  %v470_v0 = vmov 0.0   ;;  %vm471_vm0 = vmmov 0   ;;  %v39_v1 = vld [vmem:[#allocation4 + $0x8] sm:$0xff]  ;;  %v38_v2 = vld [vmem:[#allocation4] sm:$0xff] }
  0x1a   :  { %339 = vmatprep.subr.mxu0 %v470_v0  ;;  %343 = vmatprep.mubr.msk.f32.mxu0 %vm471_vm0, %v470_v0  ;;  %v37_v3 = vld [vmem:[#allocation2] sm:$0xff]  ;;  %vm77_vm1 = vcmask 130048   ;;  %v56_v4 = vld [vmem:[#allocation4 + $0x90] sm:$0xff]  ;;  %v55_v5 = vld [vmem:[#allocation4 + $0x88] sm:$0xff] }
  0x1b   :  { %346 = vmatprep.subr.mxu1 %v470_v0  ;;  %378 = vmatprep.mubr.msk.f32.mxu1 %vm471_vm0, %v470_v0  ;;  %v54_v6 = vld [vmem:[#allocation4 + $0x80] sm:$0xff]  ;;  %v53_v7 = vld [vmem:[#allocation4 + $0x78] sm:$0xff]  ;;  %v52_v8 = vld [vmem:[#allocation4 + $0x70] sm:$0xff] }
  0x1c   :  { %340 = vmatpush3.msra.mxu0 %v39_v1  ;;  %347 = vmatpush3.msra.mxu1 %v56_v4  ;;  %v51_v9 = vld [vmem:[#allocation4 + $0x68] sm:$0xff]  ;;  %v50_v10 = vld [vmem:[#allocation4 + $0x60] sm:$0xff]  ;;  %v49_v11 = vld [vmem:[#allocation4 + $0x58] sm:$0xff] }
  0x1d   :  { %341 = vmatprep.subr.mxu0 %v470_v0  ;;  %348 = vmatprep.subr.mxu1 %v470_v0  ;;  %v48_v12 = vld [vmem:[#allocation4 + $0x50] sm:$0xff]  ;;  %v47_v13 = vld [vmem:[#allocation4 + $0x48] sm:$0xff]  ;;  %v46_v14 = vld [vmem:[#allocation4 + $0x40] sm:$0xff] }
  0x1e   :  { %342 = vmatpush3.msra.mxu0 %v38_v2  ;;  %349 = vmatpush3.msra.mxu1 %v55_v5  ;;  %v45_v15 = vld [vmem:[#allocation4 + $0x38] sm:$0xff]  ;;  %v44_v16 = vld [vmem:[#allocation4 + $0x30] sm:$0xff]  ;;  %v43_v17 = vld [vmem:[#allocation4 + $0x28] sm:$0xff] }
  0x1f   :  { %344 = vmatmul.mubr.msk.f32.vlgmr.msra.gmra.mxu0 %vm77_vm1, %v37_v3  ;;  %350 = vmatprep.subr.mxu1 %v470_v0  ;;  %v42_v18 = vld [vmem:[#allocation4 + $0x20] sm:$0xff]  ;;  %v41_v19 = vld [vmem:[#allocation4 + $0x18] sm:$0xff]  ;;  %v72_v20 = vld [vmem:[#allocation4 + $0x110] sm:$0xff] }
  0x20   :  { %381 = vmatprep.subr.mxu0 %v470_v0  ;;  %351 = vmatpush3.msra.mxu1 %v54_v6  ;;  %v71_v21 = vld [vmem:[#allocation4 + $0x108] sm:$0xff]  ;;  %v70_v22 = vld [vmem:[#allocation4 + $0x100] sm:$0xff]  ;;  %v69_v23 = vld [vmem:[#allocation4 + $0xf8] sm:$0xff] }
  0x21   :  { %413 = vmatprep.mubr.msk.f32.mxu0 %vm471_vm0, %v470_v0  ;;  %352 = vmatprep.subr.mxu1 %v470_v0  ;;  %v68_v24 = vld [vmem:[#allocation4 + $0xf0] sm:$0xff]  ;;  %v67_v25 = vld [vmem:[#allocation4 + $0xe8] sm:$0xff]  ;;  %v66_v26 = vld [vmem:[#allocation4 + $0xe0] sm:$0xff] }
  0x22   :  { %353 = vmatpush3.msra.mxu1 %v53_v7  ;;  %382 = vmatpush3.msra.mxu0 %v72_v20  ;;  %v65_v27 = vld [vmem:[#allocation4 + $0xd8] sm:$0xff]  ;;  %v64_v28 = vld [vmem:[#allocation4 + $0xd0] sm:$0xff]  ;;  %v63_v29 = vld [vmem:[#allocation4 + $0xc8] sm:$0xff] }
  0x23   :  { %354 = vmatprep.subr.mxu1 %v470_v0  ;;  %383 = vmatprep.subr.mxu0 %v470_v0  ;;  %v62_v30 = vld [vmem:[#allocation4 + $0xc0] sm:$0xff]  ;;  %v61_v31 = vld [vmem:[#allocation4 + $0xb8] sm:$0xff]  ;;  %v60_v32 = vld [vmem:[#allocation4 + $0xb0] sm:$0xff] }
  0x24   :  { %355 = vmatpush3.msra.mxu1 %v52_v8  ;;  %384 = vmatpush3.msra.mxu0 %v71_v21  ;;  %v59_v33 = vld [vmem:[#allocation4 + $0xa8] sm:$0xff]  ;;  %v300_v34 = vld [vmem:[#allocation4 + $0x10] ss:$0 sm:$0xff]  ;;  %v58_v39 = vld [vmem:[#allocation4 + $0xa0] sm:$0xff] }
  0x25   :  { %356 = vmatprep.subr.mxu1 %v470_v0  ;;  %385 = vmatprep.subr.mxu0 %v470_v0  ;;  %v57_v40 = vld [vmem:[#allocation4 + $0x98] sm:$0xff] }
  0x26   :  { %357 = vmatpush3.msra.mxu1 %v51_v9  ;;  %386 = vmatpush3.msra.mxu0 %v70_v22 }
  0x27   :  { %358 = vmatprep.subr.mxu1 %v470_v0  ;;  %387 = vmatprep.subr.mxu0 %v470_v0 }
  0x28   :  { %359 = vmatpush3.msra.mxu1 %v50_v10  ;;  %388 = vmatpush3.msra.mxu0 %v69_v23 }
  0x29   :  { %360 = vmatprep.subr.mxu1 %v470_v0  ;;  %389 = vmatprep.subr.mxu0 %v470_v0 }
  0x2a   :  { %361 = vmatpush3.msra.mxu1 %v49_v11  ;;  %390 = vmatpush3.msra.mxu0 %v68_v24 }
  0x2b   :  { %362 = vmatprep.subr.mxu1 %v470_v0  ;;  %391 = vmatprep.subr.mxu0 %v470_v0 }
  0x2c   :  { %363 = vmatpush3.msra.mxu1 %v48_v12  ;;  %392 = vmatpush3.msra.mxu0 %v67_v25 }
  0x2d   :  { %364 = vmatprep.subr.mxu1 %v470_v0  ;;  %393 = vmatprep.subr.mxu0 %v470_v0 }
  0x2e   :  { %365 = vmatpush3.msra.mxu1 %v47_v13  ;;  %394 = vmatpush3.msra.mxu0 %v66_v26 }
  0x2f   :  { %366 = vmatprep.subr.mxu1 %v470_v0  ;;  %395 = vmatprep.subr.mxu0 %v470_v0 }
  0x30   :  { %367 = vmatpush3.msra.mxu1 %v46_v14  ;;  %396 = vmatpush3.msra.mxu0 %v65_v27 }
  0x31   :  { %368 = vmatprep.subr.mxu1 %v470_v0  ;;  %397 = vmatprep.subr.mxu0 %v470_v0 }
  0x32   :  { %369 = vmatpush3.msra.mxu1 %v45_v15  ;;  %398 = vmatpush3.msra.mxu0 %v64_v28 }
  0x33   :  { %370 = vmatprep.subr.mxu1 %v470_v0  ;;  %399 = vmatprep.subr.mxu0 %v470_v0 }
  0x34   :  { %371 = vmatpush3.msra.mxu1 %v44_v16  ;;  %400 = vmatpush3.msra.mxu0 %v63_v29 }
  0x35   :  { %372 = vmatprep.subr.mxu1 %v470_v0  ;;  %401 = vmatprep.subr.mxu0 %v470_v0 }
  0x36   :  { %373 = vmatpush3.msra.mxu1 %v43_v17  ;;  %402 = vmatpush3.msra.mxu0 %v62_v30 }
  0x37   :  { %374 = vmatprep.subr.mxu1 %v470_v0  ;;  %403 = vmatprep.subr.mxu0 %v470_v0 }
  0x38   :  { %375 = vmatpush3.msra.mxu1 %v42_v18  ;;  %404 = vmatpush3.msra.mxu0 %v61_v31 }
  0x39   :  { %376 = vmatprep.subr.mxu1 %v470_v0  ;;  %405 = vmatprep.subr.mxu0 %v470_v0 }
  0x3a   :  { %377 = vmatpush3.msra.mxu1 %v41_v19  ;;  %406 = vmatpush3.msra.mxu0 %v60_v32 }
  0x3b   :  { %407 = vmatprep.subr.mxu0 %v470_v0 }
  0x3c   :  { %408 = vmatpush3.msra.mxu0 %v59_v33 }
  0x3d   :  { %409 = vmatprep.subr.mxu0 %v470_v0 }
  0x3e   :  { %410 = vmatpush3.msra.mxu0 %v58_v39 }
  0x3f   :  { %411 = vmatprep.subr.mxu0 %v470_v0 }
  0x40   :  { %412 = vmatpush3.msra.mxu0 %v57_v40 }
  0xdf   :  { %v147_v35 = vpop.f32.mrf.mxu0 }
  0xe0   :  { %v148_v36 = vadd.f32 %v300_v34, %v147_v35 }
  0xe1   :  { %v345_v37 = vpop.f32.mrf.mxu0 }
  0xe2   :  { %v151_v38 = vmax.f32 %v148_v36, 0.0 }
  0xe4   :  { %379 = vmatmul.mubr.f32.vlgmr.msra.gmra.mxu1 %v151_v38 }
 0x1a4   :  { %v218_v41 = vpop.f32.mrf.mxu1 }
 0x1a5   :  { %v222_v42 = vmax.f32 %v218_v41, 0.0 }
 0x1a6   :  { %v380_v43 = vpop.f32.mrf.mxu1 }
 0x1a7   :  { %414 = vmatmul.mubr.f32.vlgmr.msra.gmra.mxu0 %v222_v42 }
 0x267   :  { %v289_v44 = vpop.f32.mrf.mxu0 }
 0x268   :  { %293 = vst [vmem:[%s538_s2] sm:$0xff] %v289_v44 }
 0x269   :  { %v415_v45 = vpop.f32.mrf.mxu0 }
 0x26a   :  { %298 = vsyncpa [#allocation3], 1 }
 0x26b   :  { %299 = vsyncpa [#allocation5], 1 }

</bundles_post_ra>
